<compile_context>
chip_gen: v7x
topology: tpu7x:2x2x1
jax: 0.10.0
libtpu: 0.0.40
codegen_flags: <defaults>
</compile_context>

<pallas_src>
import functools

import jax
import jax.numpy as jnp
from jax.experimental import pallas as pl
from jax.experimental.pallas import tpu as pltpu


def _round_up(x, m):
    return (x + m - 1) // m * m


# ----------------------------------------------------------------------------
# Kernel: `chunk` sequential SOM iterations per grid step, weights resident in
# the (constant-index) output block for the whole training loop.
# ----------------------------------------------------------------------------
def som_train_kernel(alpha_ref, invsig_ref, x_ref, w0_ref, out_ref, *, n_cols, chunk):
    """Layouts (lane-dense over the neuron axis M = m*n):
         alpha_ref, invsig_ref : (padded_steps,) SMEM   per-iteration scalars
         x_ref                 : (chunk, D)      VMEM   samples for this chunk
         w0_ref                : (D, M)          VMEM   initial weights (read at t == 0 only)
         out_ref               : (D, M)          VMEM   resident accumulator == current weights
    """
    t = pl.program_id(0)
    f32 = jnp.float32

    @pl.when(t == 0)
    def _init():
        out_ref[...] = w0_ref[...]          # load initial weights into the resident output block

    dim = out_ref.shape[0]
    n_neurons = out_ref.shape[1]
    n_f = f32(n_cols)

    # ---- iteration-invariant work, hoisted out of the per-sample loop ----
    # Lane-dense neuron-grid coordinates: neuron k sits at (k // n, k % n); exact in f32.
    ids = jax.lax.broadcasted_iota(jnp.int32, (1, n_neurons), 1)             # (1, M)
    ids_f = ids.astype(f32)
    gi = jnp.floor(ids_f / n_f)                                              # (1, M) row coord
    gj = ids_f - gi * n_f                                                    # (1, M) col coord
    # (D, D) identity mask: transpose-free (1, D) row -> (D, 1) column relayout for x
    # (a masked lane-reduce; avoids an in-kernel transpose op, exact).
    eye = (jax.lax.broadcasted_iota(jnp.int32, (dim, dim), 0)
           == jax.lax.broadcasted_iota(jnp.int32, (dim, dim), 1)).astype(f32)

    def body(s, carry):
        it = t * chunk + s
        alpha_op = alpha_ref[it]             # SMEM scalar reads at a dynamic index
        inv_sigma_sq = invsig_ref[it]

        w = out_ref[...]                     # (D, M) current weights

        # Sample s of this chunk: (1, D) row -> (D, 1) column.
        x_row = x_ref[pl.ds(s, 1), :]                                        # (1, D)
        x_col = jnp.sum(jnp.broadcast_to(x_row, (dim, dim)) * eye,
                        axis=1, keepdims=True)                               # (D, 1)

        # Squared pairwise distance (sqrt dropped: argmin-invariant), eps on the diff as in
        # nn.PairwiseDistance(p=2, eps=1e-6). Lane-dense (1, M) distance row.
        d = (x_col - w) + f32(1e-6)                                          # (D, M)
        sq = jnp.sum(d * d, axis=0, keepdims=True)                           # (1, M)

        # BMU index: first minimum (matches torch.min tie behaviour).
        bmu_idx = jnp.min(jnp.where(sq == jnp.min(sq), ids, n_neurons))      # rank-0 int32

        # BMU grid coordinates from the scalar index (no masked full-M reductions).
        bmu_f = bmu_idx.astype(f32)
        bmu_i = jnp.floor(bmu_f / n_f)
        bmu_j = bmu_f - bmu_i * n_f

        # Gaussian neighbourhood * decayed learning rate, lane-dense (1, M).
        di = gi - bmu_i
        dj = gj - bmu_j
        dsq = di * di + dj * dj
        lr = alpha_op * jnp.exp(-dsq * inv_sigma_sq)                         # (1, M)

        # Weight update (delta uses the raw (x - w), without eps, as in the module).
        out_ref[...] = w + lr * (x_col - w)
        return carry

    jax.lax.fori_loop(0, chunk, body, 0)


# ----------------------------------------------------------------------------
# Wrappers
# ----------------------------------------------------------------------------
def som_train(xs, weights, niter, alpha, sigma, n_cols, start_it=0, max_chunk=256):
    """Runs xs.shape[0] SOM iterations (it = start_it, start_it+1, ...) in a single
    pallas_call. Weights never leave VMEM between iterations; per-iteration scalars are
    precomputed on the host and read from SMEM. Returns the updated (m*n, dim) weights."""
    steps, dim = xs.shape
    n_neurons = weights.shape[0]

    chunk = min(max_chunk, _round_up(steps, 8))
    padded_steps = _round_up(steps, chunk)
    num_chunks = padded_steps // chunk

    its = jnp.arange(start_it, start_it + steps, dtype=jnp.float32)
    lr_frac = 1.0 - its / jnp.float32(niter)       # NOTE: ==0 at it==niter -> NaN at BMU (same as PyTorch)
    alpha_ops = (jnp.float32(alpha) * lr_frac).astype(jnp.float32)
    sigma_ops = jnp.float32(sigma) * lr_frac
    invsig_ops = (1.0 / (sigma_ops * sigma_ops)).astype(jnp.float32)

    xs_f = xs.astype(jnp.float32)
    pad = padded_steps - steps
    if pad:
        # Padded iterations are exact no-ops: alpha_op = 0 -> lr = 0 (invsig kept finite).
        alpha_ops = jnp.concatenate([alpha_ops, jnp.zeros((pad,), jnp.float32)])
        invsig_ops = jnp.concatenate([invsig_ops, jnp.ones((pad,), jnp.float32)])
        xs_f = jnp.concatenate([xs_f, jnp.zeros((pad, dim), jnp.float32)], axis=0)

    w0_t = jnp.transpose(weights.astype(jnp.float32))        # (dim, M): lane-dense over neurons

    out_t = pl.pallas_call(
        functools.partial(som_train_kernel, n_cols=n_cols, chunk=chunk),
        out_shape=jax.ShapeDtypeStruct((dim, n_neurons), jnp.float32),
        grid=(num_chunks,),
        in_specs=[
            pl.BlockSpec(memory_space=pltpu.MemorySpace.SMEM),     # alpha_op per iteration
            pl.BlockSpec(memory_space=pltpu.MemorySpace.SMEM),     # 1/sigma_op^2 per iteration
            pl.BlockSpec((chunk, dim), lambda t: (t, 0)),          # streamed sample chunk
            pl.BlockSpec((dim, n_neurons), lambda t: (0, 0)),      # W0 (constant block -> fetched once)
        ],
        out_specs=pl.BlockSpec((dim, n_neurons), lambda t: (0, 0)),  # resident accumulator, one writeback
        compiler_params=pltpu.CompilerParams(
            dimension_semantics=("arbitrary",),                    # strictly sequential iterations
            vmem_limit_bytes=32 * 1024 * 1024,                     # v5e scoped default is only 16 MiB
        ),
    )(alpha_ops, invsig_ops, xs_f, w0_t)

    return jnp.transpose(out_t)                                    # back to (m*n, dim)


def som_forward(x, weights, it, niter, alpha, sigma, n_cols):
    """One SOM forward step (the module's forward(x, it)). Returns updated (m*n, dim) weights."""
    return som_train(x.reshape(1, -1), weights, niter, alpha, sigma, n_cols, start_it=int(it))


# ----------------------------------------------------------------------------
# Pure-JAX references mirroring the PyTorch forward.
# ----------------------------------------------------------------------------
def som_forward_ref(x, weights, it, niter, alpha, sigma, m, n):
    lr_frac = 1.0 - float(it) / float(niter)
    alpha_op = float(alpha) * lr_frac
    sigma_op = float(sigma) * lr_frac
    ii, jj = jnp.meshgrid(jnp.arange(m), jnp.arange(n), indexing="ij")
    locations = jnp.stack([ii.reshape(-1), jj.reshape(-1)], axis=1).astype(jnp.float32)
    d = (x[None, :] - weights) + 1e-6
    dists = jnp.sqrt(jnp.sum(d * d, axis=1))
    bmu = jnp.argmin(dists)
    bmu_loc = locations[bmu]
    dsq = jnp.sum((locations - bmu_loc[None, :]) ** 2, axis=1)
    lr = alpha_op * jnp.exp(-dsq / (sigma_op ** 2))
    return weights + lr[:, None] * (x[None, :] - weights)


def som_train_ref(xs, weights, niter, alpha, sigma, m, n, start_it=0):
    w = weights
    for s in range(xs.shape[0]):
        w = som_forward_ref(xs[s], w, start_it + s, niter, alpha, sigma, m, n)
    return w


if __name__ == "__main__":
    # SOM hyperparameters (module defaults where applicable)
    m, n, dim, niter = 8, 8, 32, 100
    alpha = 0.3
    sigma = max(m, n) / 2.0
    it = 3
    steps = 64     # fused training iterations (it = 0..63 < niter, so no NaN)

    key = jax.random.PRNGKey(0)
    k_w, k_x, k_xs = jax.random.split(key, 3)

    weights = jax.random.normal(k_w, (m * n, dim), dtype=jnp.float32)   # "torch.randn(m*n, dim)"
    x = jax.random.normal(k_x, (dim,), dtype=jnp.float32)               # single input vector
    xs = jax.random.normal(k_xs, (steps, dim), dtype=jnp.float32)       # training stream

    # References
    ref_step = jax.block_until_ready(som_forward_ref(x, weights, it, niter, alpha, sigma, m, n))
    ref_train = jax.block_until_ready(som_train_ref(xs, weights, niter, alpha, sigma, m, n))

    # Fused multi-iteration kernel: W resident in VMEM (output block) for the whole loop.
    w_train = jax.block_until_ready(som_train(xs, weights, niter, alpha, sigma, n))
    assert w_train.shape == (m * n, dim)
    assert jnp.allclose(w_train, ref_train, atol=1e-3, rtol=1e-3), "fused-loop mismatch vs reference"

    # Single forward step (the module's forward(x, it)).
    w_step = jax.block_until_ready(som_forward(x, weights, it, niter, alpha, sigma, n))
    assert w_step.shape == (m * n, dim)
    assert jnp.allclose(w_step, ref_step, atol=1e-4, rtol=1e-4), "single-step mismatch vs reference"

    print("KERNEL_OK")
</pallas_src>

<mosaic_0001>
module attributes {stable_mosaic.version = 11 : i64} {
  func.func @som_train_kernel(%arg0: i32, %arg1: memref<64xf32, #tpu.memory_space<smem>>, %arg2: memref<64xf32, #tpu.memory_space<smem>>, %arg3: memref<64x32xf32, #tpu.memory_space<vmem>>, %arg4: memref<32x64xf32, #tpu.memory_space<vmem>>, %arg5: memref<32x64xf32, #tpu.memory_space<vmem>>) attributes {dimension_semantics = [#tpu.dimension_semantics<arbitrary>], iteration_bounds = array<i64: 1>, scalar_prefetch = 0 : i64, scratch_operands = 0 : i64, tpu.core_type = #tpu.core_type<tc>, window_params = [{transform_indices = @transform_0, window_bounds = array<i64: 64>}, {transform_indices = @transform_1, window_bounds = array<i64: 64>}, {transform_indices = @transform_2, window_bounds = array<i64: 64, 32>}, {pipeline_mode = #tpu.pipeline_mode<synchronous>, transform_indices = @transform_3, window_bounds = array<i64: 32, 64>}, {pipeline_mode = #tpu.pipeline_mode<synchronous>, transform_indices = @transform_4, window_bounds = array<i64: 32, 64>}]} {
    %c0_i32 = arith.constant 0 : i32
    %0 = arith.cmpi eq, %arg0, %c0_i32 : i32
    %1 = arith.extui %0 : i1 to i32
    %c0_i32_0 = arith.constant 0 : i32
    %2 = arith.cmpi ne, %1, %c0_i32_0 : i32
    scf.if %2 {
      %c0 = arith.constant 0 : index
      %c0_5 = arith.constant 0 : index
      %17 = vector.load %arg4[%c0, %c0_5] : memref<32x64xf32, #tpu.memory_space<vmem>>, vector<32x64xf32>
      %c0_6 = arith.constant 0 : index
      %c0_7 = arith.constant 0 : index
      %18 = vector.load %arg5[%c0_6, %c0_7] : memref<32x64xf32, #tpu.memory_space<vmem>>, vector<32x64xf32>
      tpu.vector_store %arg5[%c0_6, %c0_7], %17 {strides = array<i32>} : memref<32x64xf32, #tpu.memory_space<vmem>>, vector<32x64xf32>,
    } else {
    }
    %3 = tpu.iota {dimensions = array<i32: 1>} : vector<1x64xi32>
    %4 = arith.sitofp %3 : vector<1x64xi32> to vector<1x64xf32>
    %cst = arith.constant 8.000000e+00 : f32
    %5 = vector.broadcast %cst : f32 to vector<1x64xf32>
    %6 = arith.divf %4, %5 : vector<1x64xf32>
    %7 = math.floor %6 : vector<1x64xf32>
    %cst_1 = arith.constant 8.000000e+00 : f32
    %8 = vector.broadcast %cst_1 : f32 to vector<1x64xf32>
    %9 = arith.mulf %7, %8 : vector<1x64xf32>
    %10 = arith.subf %4, %9 : vector<1x64xf32>
    %11 = tpu.iota {dimensions = array<i32: 0>} : vector<32x32xi32>
    %12 = tpu.iota {dimensions = array<i32: 1>} : vector<32x32xi32>
    %13 = arith.cmpi eq, %11, %12 : vector<32x32xi32>
    %14 = arith.extui %13 : vector<32x32xi1> to vector<32x32xi32>
    %15 = arith.sitofp %14 : vector<32x32xi32> to vector<32x32xf32>
    %cst_2 = arith.constant 8.000000e+00 : f32
    %c0_i32_3 = arith.constant 0 : i32
    %c64_i32 = arith.constant 64 : i32
    %16 = arith.addi %c0_i32_3, %c64_i32 : i32
    %c1_i32 = arith.constant 1 : i32
    scf.for %arg6 = %c0_i32_3 to %16 step %c1_i32  : i32 {
      %c64_i32_5 = arith.constant 64 : i32
      %17 = arith.muli %arg0, %c64_i32_5 : i32
      %18 = arith.addi %17, %arg6 : i32
      %19 = arith.index_cast %18 : i32 to index
      %20 = memref.load %arg1[%19] : memref<64xf32, #tpu.memory_space<smem>>
      %21 = arith.index_cast %18 : i32 to index
      %22 = memref.load %arg2[%21] : memref<64xf32, #tpu.memory_space<smem>>
      %c0 = arith.constant 0 : index
      %c0_6 = arith.constant 0 : index
      %23 = vector.load %arg5[%c0, %c0_6] : memref<32x64xf32, #tpu.memory_space<vmem>>, vector<32x64xf32>
      %24 = arith.index_cast %arg6 : i32 to index
      %c0_7 = arith.constant 0 : index
      %25 = vector.load %arg3[%24, %c0_7] : memref<64x32xf32, #tpu.memory_space<vmem>>, vector<1x32xf32>
      %26 = vector.shape_cast %25 : vector<1x32xf32> to vector<1x32xf32>
      %27 = vector.broadcast %26 : vector<1x32xf32> to vector<32x32xf32>
      %28 = arith.mulf %27, %15 : vector<32x32xf32>
      %cst_8 = arith.constant dense<0.000000e+00> : vector<32xf32>
      %29 = vector.multi_reduction <add>, %28, %cst_8 [1] : vector<32x32xf32> to vector<32xf32>
      %30 = vector.shape_cast %29 : vector<32xf32> to vector<32x1xf32>
      %31 = vector.broadcast %30 : vector<32x1xf32> to vector<32x64xf32>
      %32 = arith.subf %31, %23 : vector<32x64xf32>
      %cst_9 = arith.constant 9.99999997E-7 : f32
      %33 = vector.broadcast %cst_9 : f32 to vector<32x64xf32>
      %34 = arith.addf %32, %33 : vector<32x64xf32>
      %35 = arith.mulf %34, %34 : vector<32x64xf32>
      %cst_10 = arith.constant dense<0.000000e+00> : vector<64xf32>
      %36 = vector.multi_reduction <add>, %35, %cst_10 [0] : vector<32x64xf32> to vector<64xf32>
      %37 = vector.shape_cast %36 : vector<64xf32> to vector<1x64xf32>
      %38 = vector.shape_cast %37 : vector<1x64xf32> to vector<1x1x64xf32>
      %cst_11 = arith.constant dense<0x7F800000> : vector<1xf32>
      %39 = vector.multi_reduction <minimumf>, %38, %cst_11 [1, 2] : vector<1x1x64xf32> to vector<1xf32>
      %40 = vector.shape_cast %39 : vector<1xf32> to vector<1x1x1xf32>
      %41 = vector.extract %40[0, 0, 0] : f32 from vector<1x1x1xf32>
      %42 = vector.broadcast %41 : f32 to vector<1x64xf32>
      %43 = arith.cmpf oeq, %37, %42 : vector<1x64xf32>
      %c64_i32_12 = arith.constant 64 : i32
      %44 = vector.broadcast %c64_i32_12 : i32 to vector<1x64xi32>
      %45 = arith.select %43, %3, %44 : vector<1x64xi1>, vector<1x64xi32>
      %46 = vector.shape_cast %45 : vector<1x64xi32> to vector<1x1x64xi32>
      %cst_13 = arith.constant dense<2147483647> : vector<1xi32>
      %47 = vector.multi_reduction <minsi>, %46, %cst_13 [1, 2] : vector<1x1x64xi32> to vector<1xi32>
      %48 = vector.shape_cast %47 : vector<1xi32> to vector<1x1x1xi32>
      %49 = vector.extract %48[0, 0, 0] : i32 from vector<1x1x1xi32>
      %50 = arith.sitofp %49 : i32 to f32
      %51 = arith.divf %50, %cst_2 : f32
      %52 = math.floor %51 : f32
      %53 = arith.mulf %52, %cst_2 : f32
      %54 = arith.subf %50, %53 : f32
      %55 = vector.broadcast %52 : f32 to vector<1x64xf32>
      %56 = arith.subf %7, %55 : vector<1x64xf32>
      %57 = vector.broadcast %54 : f32 to vector<1x64xf32>
      %58 = arith.subf %10, %57 : vector<1x64xf32>
      %59 = arith.mulf %56, %56 : vector<1x64xf32>
      %60 = arith.mulf %58, %58 : vector<1x64xf32>
      %61 = arith.addf %59, %60 : vector<1x64xf32>
      %cst_14 = arith.constant 0.000000e+00 : f32
      %62 = vector.broadcast %cst_14 : f32 to vector<1x64xf32>
      %63 = arith.subf %62, %61 : vector<1x64xf32>
      %64 = vector.broadcast %22 : f32 to vector<1x64xf32>
      %65 = arith.mulf %63, %64 : vector<1x64xf32>
      %66 = math.exp %65 : vector<1x64xf32>
      %67 = vector.broadcast %20 : f32 to vector<1x64xf32>
      %68 = arith.mulf %67, %66 : vector<1x64xf32>
      %69 = vector.broadcast %30 : vector<32x1xf32> to vector<32x64xf32>
      %70 = arith.subf %69, %23 : vector<32x64xf32>
      %71 = vector.broadcast %68 : vector<1x64xf32> to vector<32x64xf32>
      %72 = arith.mulf %71, %70 : vector<32x64xf32>
      %73 = arith.addf %23, %72 : vector<32x64xf32>
      %c0_15 = arith.constant 0 : index
      %c0_16 = arith.constant 0 : index
      %74 = vector.load %arg5[%c0_15, %c0_16] : memref<32x64xf32, #tpu.memory_space<vmem>>, vector<32x64xf32>
      tpu.vector_store %arg5[%c0_15, %c0_16], %73 {strides = array<i32>} : memref<32x64xf32, #tpu.memory_space<vmem>>, vector<32x64xf32>,
    }
    %c64_i32_4 = arith.constant 64 : i32
    return
  }
  func.func @transform_0(%arg0: i32) -> i32 {
    %c0_i32 = arith.constant 0 : i32
    %c0_i32_0 = arith.constant 0 : i32
    return %c0_i32 : i32
  }
  func.func @transform_1(%arg0: i32) -> i32 {
    %c0_i32 = arith.constant 0 : i32
    %c0_i32_0 = arith.constant 0 : i32
    return %c0_i32 : i32
  }
  func.func @transform_2(%arg0: i32) -> (i32, i32) {
    %c0_i32 = arith.constant 0 : i32
    %c0_i32_0 = arith.constant 0 : i32
    return %arg0, %c0_i32 : i32, i32
  }
  func.func @transform_3(%arg0: i32) -> (i32, i32) {
    %c0_i32 = arith.constant 0 : i32
    %c0_i32_0 = arith.constant 0 : i32
    %c0_i32_1 = arith.constant 0 : i32
    return %c0_i32, %c0_i32_0 : i32, i32
  }
  func.func @transform_4(%arg0: i32) -> (i32, i32) {
    %c0_i32 = arith.constant 0 : i32
    %c0_i32_0 = arith.constant 0 : i32
    %c0_i32_1 = arith.constant 0 : i32
    return %c0_i32, %c0_i32_0 : i32, i32
  }
}

</mosaic_0001>

<bundles_post_ra>
// kernel: tpu_custom_call.1
= control target key start
LH: loop header
LB: loop body
LE: loop exit
PB: predicated region body
PF: predicated region fallthrough
CT: control target
= control target key end

     0   :  { %9 = vsyncpa [#allocation4], 0  ;;  %s460_s0 = inlined_call_operand.vmem [shape: f32[64], index: 0, kind: input, shape index: {}]   ;;  %s461_s1 = inlined_call_operand.vmem [shape: f32[64], index: 1, kind: input, shape index: {}]   ;;  %s462_s2 = inlined_call_operand.vmem [shape: f32[64,32], index: 2, kind: input, shape index: {}]   ;;  %s463_s3 = inlined_call_operand.vmem [shape: f32[32,64], index: 3, kind: input, shape index: {}]   ;;  %s464_s4 = inlined_call_operand.hbm [shape: f32[32,64], index: 4, kind: output, shape index: {}]  }
   0x1   :  { %10 = vsyncpa [#allocation6], 0 }
   0x2   :  { %11 = vsyncpa [#allocation3], 0  ;;  %s18_s17 = sshll.u32 %s460_s0, 4  ;;  %s28_s20 = sshll.u32 %s461_s1, 4  ;;  %s19_s17 = int_to_ptr.vmem [resolvable:$true] %s18_s17  ;;  %s29_s20 = int_to_ptr.vmem [resolvable:$true] %s28_s20 }
   0x3   :  { %s249_s21 = scalar_lea.vmem %s19_s17, 16  ;;  %p254_p1 = scmp.lt.s32.totalorder %s19_s17, %s19_s17 }
   0x4   :  { %p250_p0 = scmp.ne.s32.totalorder %s19_s17, %s249_s21  ;;  %p255_p2 = scmp.lt.s32.totalorder %s249_s21, %s249_s21 }
   0x6   :  { %p256_p3 = por %p255_p2, %p254_p1 }
   0x8   :  { %p257_p4 = pnand %p256_p3, %p250_p0 }
   0xa   :  { %260 = shalt.err (!%p257_p4)
}
   0xb   :  { %s309_s22 = smov [#allocation2]   ;;  %s261_s23 = scalar_lea.vmem %s29_s20, 16 }
   0xc   :  { %21 = dma.vmem_to_smem %s19_s17, 16, %s309_s22, [#allocation4]  }
   0xd   :  { %p262_p5 = scmp.ne.s32.totalorder %s29_s20, %s261_s23  ;;  %p266_p6 = scmp.lt.s32.totalorder %s29_s20, %s29_s20 }
   0xe   :  { %p267_p7 = scmp.lt.s32.totalorder %s261_s23, %s261_s23 }
  0x10   :  { %p268_p8 = por %p267_p7, %p266_p6 }
  0x12   :  { %p269_p9 = pnand %p268_p8, %p262_p5 }
  0x14   :  { %272 = shalt.err (!%p269_p9)
}
  0x15   :  { %s310_s0 = smov [#allocation5]  }
  0x16   :  { %31 = dma.vmem_to_smem %s29_s20, 16, %s310_s0, [#allocation6]  }
  0x17   :  { %299 = dma.done.wait [#allocation4], 16  }
  0x18   :  { %300 = vsyncadd [#allocation4], 4294967280 }
  0x19   :  { %301 = dma.done.wait [#allocation6], 16  }
  0x1a   :  { %302 = vsyncadd [#allocation6], 4294967280 }
  0x1b   :  { %42 = sfence }
  0x1c   :  { %v47_v0 = vld [vmem:[%s463_s3] sm:$0xff]  ;;  %vm51_vm0 = vcmask 523264   ;;  %v48_v1 = vld [vmem:[%s463_s3 + $0x8] sm:$0xff]  ;;  %v49_v2 = vld [vmem:[%s463_s3 + $0x10] sm:$0xff]  ;;  %v56_v3 = vlaneseq  ;;  %v311_v12 = vmov 0.0  }
  0x1d   :  { %52 = vst.msk [vmem:[#allocation7] sm:$0xff] %vm51_vm0, %v47_v0  ;;  %53 = vst.msk [vmem:[#allocation7 + $0x8] sm:$0xff] %vm51_vm0, %v48_v1  ;;  %v50_v4 = vld [vmem:[%s463_s3 + $0x18] sm:$0xff]  ;;  %s384_s3 = smov 0  }
  0x1e   :  { %54 = vst.msk [vmem:[#allocation7 + $0x10] sm:$0xff] %vm51_vm0, %v49_v2  ;;  %55 = vst.msk [vmem:[#allocation7 + $0x18] sm:$0xff] %vm51_vm0, %v50_v4  ;;  %v362_v5 = vand.u32 127, %v56_v3  ;;  %v65_v6 = vshrl.u32 %v56_v3, 7 }
  0x20   :  { %v58_v7 = vcvt.s32.f32 %v362_v5  ;;  %v66_v8 = vadd.s32 8, %v65_v6  ;;  %v67_v9 = vadd.s32 16, %v65_v6  ;;  %v68_v10 = vadd.s32 24, %v65_v6 }
  0x21   :  { %vm69_vm1 = vcmp.eq.s32.totalorder %v65_v6, %v362_v5 }
  0x22   :  { %v366_v11 = vmul.f32 0.125, %v58_v7  ;;  %vm70_vm2 = vcmp.eq.s32.totalorder %v66_v8, %v362_v5  ;;  %vm71_vm3 = vcmp.eq.s32.totalorder %v67_v9, %v362_v5  ;;  %vm72_vm4 = vcmp.eq.s32.totalorder %v68_v10, %v362_v5 }
  0x23   :  { %v371_v13 = vsel %vm69_vm1, 1.0, %v311_v12  ;;  %v373_v14 = vsel %vm70_vm2, 1.0, %v311_v12  ;;  %v375_v15 = vsel %vm71_vm3, 1.0, %v311_v12  ;;  %v377_v16 = vsel %vm72_vm4, 1.0, %v311_v12 }
  0x24   :  { %v61_v17 = vfloor.f32 %v366_v11 }
  0x26   :  { %v62_v18 = vmul.f32 8.0, %v61_v17 }
  0x28   :  { %v382_v19 = vsub.f32 %v58_v7, %v62_v18 }
  0x29 LB: > { %s95_s7 = scalar_lea.vmem %s462_s2, %s307_s3  ;;  %vm105_vm5 = vcmask 261120   ;;  %v397_v29 = vld [vmem:[#allocation7] sm:$0xff]  ;;  %v399_v30 = vld [vmem:[#allocation7 + $0x10] sm:$0xff]  ;;  %v407_v35 = vld [vmem:[#allocation7 + $0x8] sm:$0xff]  ;;  %s90_s14 = sld [smem:[#allocation5 + %s307_s3]]  ;;  %s307_s3 = sphi %s384_s3, %s86_s3  }
  0x2a   : > { %v228_v20 = vld [vmem:[%s95_s7] ss:$0 sm:$0xff]  ;;  %v409_v36 = vld [vmem:[#allocation7 + $0x18] sm:$0xff]  ;;  %s89_s16 = sld [smem:[#allocation2 + %s307_s3]]  ;;  %s86_s3 = sadd.s32 1, %s307_s3  }
  0x2b   : > { %v101_v21 = vmul.f32 %v228_v20, %v371_v13  ;;  %v103_v22 = vmul.f32 %v228_v20, %v375_v15  ;;  %v102_v23 = vmul.f32 %v228_v20, %v373_v14  ;;  %v104_v24 = vmul.f32 %v228_v20, %v377_v16  ;;  %p83_p10 = scmp.ge.s32.totalorder %s86_s3, 64  }
  0x2c   :  { %s312_s17 = smov (%p83_p10), [#allocation7]  }
  0x2d   : > { %v106_v25 = vsel %vm105_vm5, %v101_v21, 0.0  ;;  %v112_v26 = vsel %vm105_vm5, %v103_v22, 0.0  ;;  %v109_v27 = vsel %vm105_vm5, %v102_v23, 0.0  ;;  %v115_v28 = vsel %vm105_vm5, %v104_v24, 0.0  ;;  %s205_s18 = sshll.u32 (%p83_p10), %s312_s17, 4  ;;  %s206_s18 = int_to_ptr.vmem [resolvable:$true] %s205_s18 }
  0x2e   : > { %107 = vadd.xlane.f32.xlu0 %v106_v25  ;;  %113 = vadd.xlane.f32.xlu1 %v112_v26  ;;  %s273_s19 = scalar_lea.vmem (%p83_p10), %s206_s18, 512  ;;  %p278_p12 = scmp.lt.s32.totalorder (%p83_p10), %s206_s18, %s206_s18 }
  0x2f   :  { %p274_p11 = scmp.ne.s32.totalorder (%p83_p10), %s206_s18, %s273_s19  ;;  %p279_p13 = scmp.lt.s32.totalorder (%p83_p10), %s273_s19, %s273_s19 }
  0x31   :  { %p280_p0 = por (%p83_p10), %p279_p13, %p278_p12 }
  0x32   : > { %110 = vadd.xlane.f32.xlu0 %v109_v27  ;;  %116 = vadd.xlane.f32.xlu1 %v115_v28 }
  0x33   :  { %p281_p1 = pnand (%p83_p10), %p280_p0, %p274_p11 }
  0xbb   : > { %v108_v31 = vpop.xlane.xlu0 %107  ;;  %v114_v32 = vpop.xlane.xlu1 %113 }
  0xbc   : > { %v402_v33 = vsub.f32 %v108_v31, %v397_v29  ;;  %v405_v34 = vsub.f32 %v114_v32, %v399_v30  ;;  %v182_v31 = vstv %s90_s14 }
  0xbe   : > { %v122_v37 = vadd.f32 1e-06, %v402_v33  ;;  %v124_v40 = vadd.f32 1e-06, %v405_v34 }
  0xbf   : > { %v111_v38 = vpop.xlane.xlu0 %110  ;;  %v117_v39 = vpop.xlane.xlu1 %116 }
  0xc0   : > { %v414_v41 = vsub.f32 %v111_v38, %v407_v35  ;;  %v417_v42 = vsub.f32 %v117_v39, %v409_v36  ;;  %v126_v43 = vmul.f32 %v122_v37, %v122_v37  ;;  %v128_v46 = vmul.f32 %v124_v40, %v124_v40 }
  0xc1   : > { %v186_v39 = vstv %s89_s16 }
  0xc2   : > { %v123_v44 = vadd.f32 1e-06, %v414_v41  ;;  %v125_v45 = vadd.f32 1e-06, %v417_v42  ;;  %v131_v49 = vsel %vm51_vm0, %v126_v43, 0.0  ;;  %v134_v52 = vsel %vm51_vm0, %v128_v46, 0.0 }
  0xc4   : > { %v127_v47 = vmul.f32 %v123_v44, %v123_v44  ;;  %v129_v48 = vmul.f32 %v125_v45, %v125_v45 }
  0xc6   : > { %v132_v50 = vsel %vm51_vm0, %v127_v47, 0.0  ;;  %v136_v53 = vsel %vm51_vm0, %v129_v48, 0.0 }
  0xc7   : > { %v133_v51 = vadd.f32 %v132_v50, %v131_v49 }
  0xc9   : > { %v135_v54 = vadd.f32 %v134_v52, %v133_v51 }
  0xcb   : > { %v137_v55 = vadd.f32 %v136_v53, %v135_v54 }
  0xcd   : > { %v138_v56 = vrot.slane %v137_v55, 4 }
  0xcf   : > { %v139_v57 = vadd.f32 %v138_v56, %v137_v55 }
  0xd1   : > { %v140_v58 = vrot.slane %v139_v57, 2 }
  0xd3   : > { %v141_v59 = vadd.f32 %v140_v58, %v139_v57 }
  0xd5   : > { %v142_v60 = vrot.slane %v141_v59, 1 }
  0xd7   : > { %v143_v61 = vadd.f32 %v142_v60, %v141_v59 }
  0xd9   : > { %v144_v62 = vsel %vm51_vm0, %v143_v61, inf }
  0xda   : > { %145 = vmin.xlane.f32.xlu0 %v144_v62 }
 0x167   : > { %v146_v63 = vpop.xlane.xlu0 %145 }
 0x168   : > { %229 = vpush %v146_v63 }
 0x199   : > { %s230_s8 = spop %229 }
 0x19a   : > { %v148_v0 = vstv %s230_s8 }
 0x19b   : > { %vm149_vm6 = vcmp.eq.f32.partialorder %v143_v61, %v148_v0 }
 0x19c   : > { %v150_v1 = vsel %vm149_vm6, %v362_v5, 64 }
 0x19d   : > { %v151_v2 = vsel %vm51_vm0, %v150_v1, 2147483647 }
 0x19e   : > { %v153_v3 = vshra.s32 %v151_v2, 16  ;;  %v152_v6 = vand.u32 65535, %v151_v2 }
 0x1a0   : > { %v155_v4 = vcvt.s32.f32 %v153_v3  ;;  %v154_v8 = vcvt.s32.f32 %v152_v6 }
 0x1a2   : > { %156 = vmin.xlane.f32.xlu1 %v155_v4 }
 0x22f   : > { %v157_v7 = vpop.xlane.xlu1 %156 }
 0x230   : > { %vm158_vm7 = vcmp.eq.f32.partialorder %v155_v4, %v157_v7  ;;  %v163_v10 = vcvt.f32.s32 %v157_v7 }
 0x231   : > { %v159_v9 = vsel %vm158_vm7, %v154_v8, inf }
 0x232   : > { %160 = vmin.xlane.f32.xlu0 %v159_v9  ;;  %v164_v18 = vshll.u32 %v163_v10, 16 }
 0x2bf   : > { %v161_v12 = vpop.xlane.xlu0 %160 }
 0x2c0   : > { %v162_v20 = vcvt.f32.s32 %v161_v12 }
 0x2c2   : > { %v165_v21 = vadd.s32 %v164_v18, %v162_v20 }
 0x2c4   : > { %231 = vpush %v165_v21 }
 0x2f5   : > { %s232_s9 = spop %231 }
 0x2f6   : > { %s167_s10 = scvt.s32.f32 %s232_s9 }
 0x2f8   : > { %s170_s11 = smul.f32 0.125, %s167_s10 }
 0x2fa   : > { %s171_s12 = sfloor.f32 %s170_s11 }
 0x2fb   : > { %s172_s13 = smul.f32 8.0, %s171_s12  ;;  %v174_v22 = vstv %s171_s12 }
 0x2fc   : > { %v175_v23 = vsub.f32 %v61_v17, %v174_v22 }
 0x2fd   : > { %s173_s15 = ssub.f32 %s167_s10, %s172_s13 }
 0x2fe   : > { %v178_v26 = vmul.f32 %v175_v23, %v175_v23 }
 0x2ff   : > { %v176_v24 = vstv %s173_s15 }
 0x300   : > { %v177_v25 = vsub.f32 %v382_v19, %v176_v24 }
 0x302   : > { %v179_v27 = vmul.f32 %v177_v25, %v177_v25 }
 0x304   : > { %v180_v28 = vadd.f32 %v179_v27, %v178_v26 }
 0x306   : > { %v181_v32 = vsub.f32 0.0, %v180_v28 }
 0x308   : > { %v183_v37 = vmul.f32 %v182_v31, %v181_v32 }
 0x30a   : > { %v184_v38 = vmul.f32 1.442695, %v183_v37 }
 0x30c   : > { %247 = vpow2.f32 %v184_v38 }
 0x316   : > { %v248_v40 = vpop.eup %247 }
 0x317   : > { %v187_v43 = vmul.f32 %v248_v40, %v186_v39 }
 0x318   :  { %85 = sbr.rel (!%p83_p10) target bundleno = 41 (0x29), region = 56 }
 0x319   : > { %v188_v44 = vmul.f32 %v187_v43, %v402_v33  ;;  %v189_v45 = vmul.f32 %v187_v43, %v414_v41  ;;  %v190_v46 = vmul.f32 %v187_v43, %v405_v34  ;;  %v191_v47 = vmul.f32 %v187_v43, %v417_v42 }
 0x31b   : > { %v192_v48 = vadd.f32 %v188_v44, %v397_v29  ;;  %v193_v49 = vadd.f32 %v189_v45, %v407_v35  ;;  %v194_v50 = vadd.f32 %v190_v46, %v399_v30  ;;  %v195_v51 = vadd.f32 %v191_v47, %v409_v36 }
 0x31d   : > { %196 = vst.msk [vmem:[#allocation7] sm:$0xff] %vm51_vm0, %v192_v48  ;;  %197 = vst.msk [vmem:[#allocation7 + $0x8] sm:$0xff] %vm51_vm0, %v193_v49 }
 0x31e   : > { %198 = vst.msk [vmem:[#allocation7 + $0x10] sm:$0xff] %vm51_vm0, %v194_v50  ;;  %199 = vst.msk [vmem:[#allocation7 + $0x18] sm:$0xff] %vm51_vm0, %v195_v51 }
 0x31f   :  { %284 = shalt.err (!%p281_p1)
}
 0x320   :  { %s285_s22 = scalar_lea.hbm %s464_s4, 512 }
 0x321   :  { %p286_p2 = scmp.ne.s32.totalorder %s464_s4, %s285_s22  ;;  %p289_p3 = scmp.lt.u32.totalorder %s285_s22, %s464_s4 }
 0x323   :  { %p291_p4 = pnand %p289_p3, %p286_p2 }
 0x325   :  { %294 = shalt.err (!%p291_p4)
}
 0x326   :  { %s313_s2 = smov 128   ;;  %s314_s25 = smov 8  }
 0x327   :  { %211 = dma.vmem_to_hbm [thread:$0]  %s206_s18, 512, %s464_s4, [#allocation3], %s313_s2, %s313_s2, %s314_s25  }
 0x328   :  { %303 = dma.done.wait [#allocation3], 512  }
 0x329   :  { %304 = vsyncadd [#allocation3], 4294966784 }
 0x32a   :  { %215 = vsyncpa [#allocation3], 1 }
 0x32b   :  { %216 = vsyncpa [#allocation4], 1 }
 0x32c   :  { %217 = vsyncpa [#allocation6], 1 }

</bundles_post_ra>
